<compile_context>
chip_gen: v6e
topology: v6e:2x2x1
jax: 0.10.0
libtpu: 0.0.40
codegen_flags: <defaults>
</compile_context>

<pallas_src>
import functools
import math

import jax
import jax.numpy as jnp
from jax.experimental import pallas as pl
from jax.experimental.pallas import tpu as pltpu


_SQRT_2_OVER_PI = math.sqrt(2.0 / math.pi)


def _gelu_tanh(x):
    # tanh-approximate GELU (tanh runs on the EUP slot, essentially free next to MXU work).
    return 0.5 * x * (1.0 + jnp.tanh(_SQRT_2_OVER_PI * (x + 0.044715 * x * x * x)))


# ---------------------------------------------------------------------------
# Generation-aware VMEM budget
# ---------------------------------------------------------------------------

def _vmem_capacity_bytes():
    try:
        info = pltpu.get_tpu_info()
        cap = int(getattr(info, "vmem_capacity_bytes", 0) or 0)
        if cap > 0:
            return cap
    except Exception:
        pass
    return 64 * 1024 * 1024  # conservative fallback (v7x-sized)


_VMEM_CAP = _vmem_capacity_bytes()
# scoped limit handed to Mosaic (leave headroom for compiler temps)
_VMEM_LIMIT = min(int(_VMEM_CAP * 0.80), _VMEM_CAP - (4 << 20))
# what we plan resident weights / tiles against
_VMEM_BUDGET = int(_VMEM_CAP * 0.70)


# ---------------------------------------------------------------------------
# Fused (weight-resident) FeedForward kernel: h never hits HBM
# ---------------------------------------------------------------------------

def _ff_fused_kernel(x_ref, w1_ref, b1_ref, w2_ref, b2_ref, o_ref, *,
                     glu, inner_dim):
    """out = (GELU(x@W1 + b1)  or  GEGLU(x@W1 + b1)) @ W2 + b2, one row tile."""
    x = x_ref[...]
    h = jnp.dot(x, w1_ref[...], preferred_element_type=jnp.float32)
    h = h + b1_ref[...].astype(jnp.float32)
    if glu:
        val = h[:, :inner_dim]
        gate = h[:, inner_dim:]
        h = val * _gelu_tanh(gate)
    else:
        h = _gelu_tanh(h)
    # Dropout(p=0.0) == identity.
    h = h.astype(w2_ref.dtype)  # bf16 for the MXU path, f32 in debug mode
    out = jnp.dot(h, w2_ref[...], preferred_element_type=jnp.float32)
    out = out + b2_ref[...].astype(jnp.float32)
    o_ref[...] = out.astype(o_ref.dtype)


def _pick_row_tile(R, cap):
    """Largest legal row tile <= cap (mult of 16, else 8, else full extent)."""
    if R <= cap:
        return R
    for pref in (16, 8):
        t = (cap // pref) * pref
        while t >= pref:
            if R % t == 0:
                return t
            t -= pref
    return R  # full extent is always a legal block size


def _fused_row_tile(R, Din, H1, inner, Dout, mxu_bytes, out_bytes, budget):
    """Return a row tile size if the fused weight-resident path fits VMEM, else None."""
    weight_bytes = (Din * H1 + inner * Dout) * mxu_bytes + (H1 + Dout) * 4
    if weight_bytes > budget:
        return None

    def tile_bytes(tm):
        return (2 * tm * Din * mxu_bytes        # x row tile, double-buffered
                + 2 * tm * Dout * out_bytes     # out row tile, double-buffered
                + tm * H1 * 4                   # f32 hidden temp
                + tm * H1 * mxu_bytes           # hidden cast for 2nd matmul
                + tm * Dout * 4)                # f32 out temp

    for cap in (1024, 512, 256, 128, 64, 32, 16, 8):
        tm = _pick_row_tile(R, cap)
        if weight_bytes + tile_bytes(tm) <= budget:
            # v7x megacore: prefer >= 2 row-grid programs when cheap to do.
            if R // tm < 2:
                half = tm // 2
                if half >= 16 and half % 8 == 0 and R % half == 0:
                    tm = half
            return tm
    return None


def pallas_feedforward_fused(x2d, w1, b1, w2, b2, *, glu, inner_dim, tm, out_dtype):
    R, Din = x2d.shape
    H1 = w1.shape[1]
    Dout = w2.shape[1]
    b1_2d = b1.reshape(1, H1).astype(jnp.float32)
    b2_2d = b2.reshape(1, Dout).astype(jnp.float32)

    kernel = functools.partial(_ff_fused_kernel, glu=glu, inner_dim=inner_dim)

    x_bytes = jnp.dtype(x2d.dtype).itemsize
    w_bytes = jnp.dtype(w1.dtype).itemsize
    o_bytes = jnp.dtype(out_dtype).itemsize
    cost = pl.CostEstimate(
        flops=2 * R * Din * H1 + 2 * R * inner_dim * Dout,
        transcendentals=R * inner_dim,
        bytes_accessed=(R * Din * x_bytes + Din * H1 * w_bytes + H1 * 4
                        + inner_dim * Dout * w_bytes + Dout * 4
                        + R * Dout * o_bytes),
    )

    return pl.pallas_call(
        kernel,
        out_shape=jax.ShapeDtypeStruct((R, Dout), out_dtype),
        grid_spec=pltpu.PrefetchScalarGridSpec(
            num_scalar_prefetch=0,
            grid=(R // tm,),
            in_specs=[
                pl.BlockSpec((tm, Din), lambda i: (i, 0)),     # streamed rows
                pl.BlockSpec((Din, H1), lambda i: (0, 0)),     # resident W1
                pl.BlockSpec((1, H1), lambda i: (0, 0)),       # resident b1
                pl.BlockSpec((inner_dim, Dout), lambda i: (0, 0)),  # resident W2
                pl.BlockSpec((1, Dout), lambda i: (0, 0)),     # resident b2
            ],
            out_specs=pl.BlockSpec((tm, Dout), lambda i: (i, 0)),
        ),
        compiler_params=pltpu.CompilerParams(
            dimension_semantics=("parallel",),
            vmem_limit_bytes=_VMEM_LIMIT,
        ),
        cost_estimate=cost,
    )(x2d, w1, b1_2d, w2, b2_2d)


# ---------------------------------------------------------------------------
# Fallback two-pass, K-tiled kernels (used only when weights don't fit VMEM)
# ---------------------------------------------------------------------------

def _linear_kernel(x_ref, w_ref, b_ref, o_ref, acc_ref, *, apply_gelu):
    """Tiled matmul with K-axis reduction, fused bias (+ optional GELU) epilogue."""
    @pl.when(pl.program_id(2) == 0)
    def _():
        acc_ref[...] = jnp.zeros_like(acc_ref)

    acc_ref[...] += jnp.dot(x_ref[...], w_ref[...],
                            preferred_element_type=jnp.float32)

    @pl.when(pl.program_id(2) == pl.num_programs(2) - 1)
    def _():
        y = acc_ref[...] + b_ref[...].astype(jnp.float32)
        if apply_gelu:
            y = _gelu_tanh(y)
        o_ref[...] = y.astype(o_ref.dtype)


def _geglu_kernel(x_ref, wx_ref, wg_ref, bx_ref, bg_ref, o_ref,
                  accx_ref, accg_ref):
    """Fused GEGLU projection: out = (x@Wx + bx) * gelu(x@Wg + bg)."""
    @pl.when(pl.program_id(2) == 0)
    def _():
        accx_ref[...] = jnp.zeros_like(accx_ref)
        accg_ref[...] = jnp.zeros_like(accg_ref)

    x = x_ref[...]
    accx_ref[...] += jnp.dot(x, wx_ref[...], preferred_element_type=jnp.float32)
    accg_ref[...] += jnp.dot(x, wg_ref[...], preferred_element_type=jnp.float32)

    @pl.when(pl.program_id(2) == pl.num_programs(2) - 1)
    def _():
        val = accx_ref[...] + bx_ref[...].astype(jnp.float32)
        gate = accg_ref[...] + bg_ref[...].astype(jnp.float32)
        o_ref[...] = (val * _gelu_tanh(gate)).astype(o_ref.dtype)


_ROW_TILES = (512, 256, 128, 64, 32, 16, 8)      # sublane axis
_LANE_TILES = (1024, 512, 256, 128)              # lane / K axes


def _pick_tile(dim, candidates):
    for t in candidates:
        if t <= dim and dim % t == 0:
            return t
    return dim  # full extent is always a legal block size


def _grid_and_tiles(R, Din, Dout):
    tm = _pick_tile(R, _ROW_TILES)
    tn = _pick_tile(Dout, _LANE_TILES)
    tk = _pick_tile(Din, _LANE_TILES)
    return (R // tm, Dout // tn, Din // tk), tm, tn, tk


def _compiler_params_3d():
    return pltpu.CompilerParams(
        dimension_semantics=("parallel", "parallel", "arbitrary"),
        vmem_limit_bytes=_VMEM_LIMIT,
    )


def _linear_cost(R, Din, Dout, x, w, out_dtype, gelu):
    xb = jnp.dtype(x.dtype).itemsize
    wb = jnp.dtype(w.dtype).itemsize
    ob = jnp.dtype(out_dtype).itemsize
    return pl.CostEstimate(
        flops=2 * R * Din * Dout,
        transcendentals=R * Dout if gelu else 0,
        bytes_accessed=R * Din * xb + Din * Dout * wb + Dout * 4 + R * Dout * ob,
    )


def pallas_linear(x2d, w, b, *, apply_gelu=False, out_dtype=None):
    """x2d: (R, Din), w: (Din, Dout), b: (Dout,) -> (R, Dout). Tiled + pipelined."""
    R, Din = x2d.shape
    Dout = w.shape[1]
    out_dtype = x2d.dtype if out_dtype is None else out_dtype
    b2d = b.reshape(1, Dout).astype(jnp.float32)

    grid, tm, tn, tk = _grid_and_tiles(R, Din, Dout)
    kernel = functools.partial(_linear_kernel, apply_gelu=apply_gelu)

    return pl.pallas_call(
        kernel,
        out_shape=jax.ShapeDtypeStruct((R, Dout), out_dtype),
        grid_spec=pltpu.PrefetchScalarGridSpec(
            num_scalar_prefetch=0,
            grid=grid,
            in_specs=[
                pl.BlockSpec((tm, tk), lambda i, j, k: (i, k)),
                pl.BlockSpec((tk, tn), lambda i, j, k: (k, j)),
                pl.BlockSpec((1, tn), lambda i, j, k: (0, j)),
            ],
            out_specs=pl.BlockSpec((tm, tn), lambda i, j, k: (i, j)),
            scratch_shapes=[pltpu.VMEM((tm, tn), jnp.float32)],
        ),
        compiler_params=_compiler_params_3d(),
        cost_estimate=_linear_cost(R, Din, Dout, x2d, w, out_dtype, apply_gelu),
    )(x2d, w, b2d)


def pallas_geglu(x2d, w_x, w_g, b_x, b_g, *, out_dtype=None):
    """Fused GEGLU: (x@Wx + bx) * gelu(x@Wg + bg).  x2d: (R, Din) -> (R, Dout)."""
    R, Din = x2d.shape
    Dout = w_x.shape[1]
    out_dtype = x2d.dtype if out_dtype is None else out_dtype
    bx2d = b_x.reshape(1, Dout).astype(jnp.float32)
    bg2d = b_g.reshape(1, Dout).astype(jnp.float32)

    grid, tm, tn, tk = _grid_and_tiles(R, Din, Dout)
    wb = jnp.dtype(w_x.dtype).itemsize
    cost = pl.CostEstimate(
        flops=4 * R * Din * Dout,
        transcendentals=R * Dout,
        bytes_accessed=(R * Din * jnp.dtype(x2d.dtype).itemsize
                        + 2 * Din * Dout * wb + 2 * Dout * 4
                        + R * Dout * jnp.dtype(out_dtype).itemsize),
    )

    return pl.pallas_call(
        _geglu_kernel,
        out_shape=jax.ShapeDtypeStruct((R, Dout), out_dtype),
        grid_spec=pltpu.PrefetchScalarGridSpec(
            num_scalar_prefetch=0,
            grid=grid,
            in_specs=[
                pl.BlockSpec((tm, tk), lambda i, j, k: (i, k)),
                pl.BlockSpec((tk, tn), lambda i, j, k: (k, j)),
                pl.BlockSpec((tk, tn), lambda i, j, k: (k, j)),
                pl.BlockSpec((1, tn), lambda i, j, k: (0, j)),
                pl.BlockSpec((1, tn), lambda i, j, k: (0, j)),
            ],
            out_specs=pl.BlockSpec((tm, tn), lambda i, j, k: (i, j)),
            scratch_shapes=[pltpu.VMEM((tm, tn), jnp.float32),
                            pltpu.VMEM((tm, tn), jnp.float32)],
        ),
        compiler_params=_compiler_params_3d(),
        cost_estimate=cost,
    )(x2d, w_x, w_g, bx2d, bg2d)


# ---------------------------------------------------------------------------
# FeedForward module (JAX glue around the Pallas kernels)
# ---------------------------------------------------------------------------

class FeedForwardPallas:
    def __init__(self, dim, dim_out=None, mult=4, glu=False, dropout=0.0,
                 key=None, mxu_dtype=jnp.bfloat16, force_two_pass=False):
        inner_dim = int(dim * mult)
        dim_out = dim if dim_out is None else dim_out
        self.dim = dim
        self.inner_dim = inner_dim
        self.dim_out = dim_out
        self.glu = glu
        self.mxu_dtype = mxu_dtype          # None => f32 debug path
        self.force_two_pass = force_two_pass
        # Dropout(p=dropout): evaluated in eval mode / p=0.0 -> identity.

        if key is None:
            key = jax.random.PRNGKey(0)
        k_in, k_out = jax.random.split(key, 2)

        # PyTorch Linear weights are (out, in); store transposed (in, out) for x @ W.
        def init_linear(k, fan_in, fan_out):
            kw, kb = jax.random.split(k)
            bound = 1.0 / math.sqrt(fan_in)
            w = jax.random.uniform(kw, (fan_in, fan_out), jnp.float32,
                                   minval=-bound, maxval=bound)
            bvec = jax.random.uniform(kb, (fan_out,), jnp.float32,
                                      minval=-bound, maxval=bound)
            return w, bvec

        # GEGLU: one concatenated projection Linear(dim, 2*inner); chunk(2, -1)
        # -> first half value, second half gate.
        h1 = inner_dim * 2 if glu else inner_dim
        self.w_in, self.b_in = init_linear(k_in, dim, h1)
        self.w_out, self.b_out = init_linear(k_out, inner_dim, dim_out)

    def __call__(self, x):
        lead_shape = x.shape[:-1]
        R = 1
        for s in lead_shape:
            R *= int(s)
        x2d = x.reshape(R, self.dim)
        out_dtype = x.dtype

        mxu = self.mxu_dtype
        if mxu is not None:
            x_c = x2d.astype(mxu)
            w1 = self.w_in.astype(mxu)
            w2 = self.w_out.astype(mxu)
            mxu_bytes = jnp.dtype(mxu).itemsize
        else:
            x_c, w1, w2 = x2d, self.w_in, self.w_out
            mxu_bytes = jnp.dtype(x2d.dtype).itemsize

        H1 = self.w_in.shape[1]
        tm = None
        if not self.force_two_pass:
            tm = _fused_row_tile(R, self.dim, H1, self.inner_dim, self.dim_out,
                                 mxu_bytes, jnp.dtype(out_dtype).itemsize,
                                 _VMEM_BUDGET)

        if tm is not None:
            # Fused, weight-resident path: hidden activation never hits HBM.
            out2d = pallas_feedforward_fused(
                x_c, w1, self.b_in, w2, self.b_out,
                glu=self.glu, inner_dim=self.inner_dim, tm=tm,
                out_dtype=out_dtype)
        else:
            # Two-pass fallback (weights too large for resident VMEM).
            h_dtype = out_dtype if mxu is None else mxu
            if self.glu:
                wx = w1[:, :self.inner_dim]
                wg = w1[:, self.inner_dim:]
                bx = self.b_in[:self.inner_dim]
                bg = self.b_in[self.inner_dim:]
                h = pallas_geglu(x_c, wx, wg, bx, bg, out_dtype=h_dtype)
            else:
                h = pallas_linear(x_c, w1, self.b_in, apply_gelu=True,
                                  out_dtype=h_dtype)
            if mxu is not None:
                h = h.astype(mxu)
            # Dropout(p=0.0) == identity.
            out2d = pallas_linear(h, w2, self.b_out, apply_gelu=False,
                                  out_dtype=out_dtype)

        return out2d.reshape(*lead_shape, self.dim_out)


# ---------------------------------------------------------------------------
# Pure-JAX reference (same tanh-GELU formulation) for sanity checking
# ---------------------------------------------------------------------------

def reference_forward(mod, x):
    x2d = x.reshape(-1, mod.dim).astype(jnp.float32)
    h = x2d @ mod.w_in + mod.b_in
    if mod.glu:
        val, gate = h[:, :mod.inner_dim], h[:, mod.inner_dim:]
        h = val * _gelu_tanh(gate)
    else:
        h = _gelu_tanh(h)
    out = h @ mod.w_out + mod.b_out
    return out.reshape(*x.shape[:-1], mod.dim_out)


# ---------------------------------------------------------------------------
if __name__ == "__main__":
    key = jax.random.PRNGKey(0)
    kx, kx2, kp1, kp2 = jax.random.split(key, 4)

    # small shapes consistent with the module: batch=2, seq=8, dim=32 -> inner=128
    B, N, dim = 2, 8, 32
    x = jax.random.normal(kx, (B, N, dim), jnp.float32)

    # 1) f32 debug path, GELU variant (fused kernel), exact-ish vs reference
    ff32 = FeedForwardPallas(dim, mult=4, glu=False, key=kp1, mxu_dtype=None)
    out32 = jax.block_until_ready(ff32(x))
    ref = reference_forward(ff32, x)
    assert out32.shape == (B, N, dim)
    assert jnp.allclose(out32, ref, atol=1e-4, rtol=1e-4), (
        float(jnp.max(jnp.abs(out32 - ref))))

    # 2) f32 debug path, GEGLU variant (fused kernel)
    ffg32 = FeedForwardPallas(dim, mult=4, glu=True, key=kp2, mxu_dtype=None)
    outg32 = jax.block_until_ready(ffg32(x))
    refg = reference_forward(ffg32, x)
    assert outg32.shape == (B, N, dim)
    assert jnp.allclose(outg32, refg, atol=1e-4, rtol=1e-4), (
        float(jnp.max(jnp.abs(outg32 - refg))))

    # 3) default bf16 MXU path (fused kernel), looser tolerance
    ffbf = FeedForwardPallas(dim, mult=4, glu=False, key=kp1)  # bf16 default
    outbf = jax.block_until_ready(ffbf(x)).astype(jnp.float32)
    assert jnp.allclose(outbf, ref, atol=5e-2, rtol=5e-2), (
        float(jnp.max(jnp.abs(outbf - ref))))

    # 4) default bf16 MXU path, GEGLU (fused kernel)
    ffgbf = FeedForwardPallas(dim, mult=4, glu=True, key=kp2)
    outgbf = jax.block_until_ready(ffgbf(x)).astype(jnp.float32)
    assert jnp.allclose(outgbf, refg, atol=5e-2, rtol=5e-2), (
        float(jnp.max(jnp.abs(outgbf - refg))))

    # 5) exercise the two-pass fallback kernels (K-tiled) on both variants
    ff32.force_two_pass = True
    out_tp = jax.block_until_ready(ff32(x))
    assert jnp.allclose(out_tp, ref, atol=1e-4, rtol=1e-4), (
        float(jnp.max(jnp.abs(out_tp - ref))))
    ff32.force_two_pass = False

    ffg32.force_two_pass = True
    outg_tp = jax.block_until_ready(ffg32(x))
    assert jnp.allclose(outg_tp, refg, atol=1e-4, rtol=1e-4), (
        float(jnp.max(jnp.abs(outg_tp - refg))))
    ffg32.force_two_pass = False

    # 6) slightly larger (still small) case to exercise a >1 row-tile grid on
    #    the fused weight-resident path: R=256, dim=64 -> inner=256, 2 row tiles
    B2, N2, dim2 = 2, 128, 64
    xb = jax.random.normal(kx2, (B2, N2, dim2), jnp.float32)
    ffbig = FeedForwardPallas(dim2, mult=4, glu=True, key=kp1)  # bf16 default
    outbig = jax.block_until_ready(ffbig(xb)).astype(jnp.float32)
    refbig = reference_forward(ffbig, xb)
    assert outbig.shape == (B2, N2, dim2)
    assert jnp.allclose(outbig, refbig, atol=5e-2, rtol=5e-2), (
        float(jnp.max(jnp.abs(outbig - refbig))))

    print("KERNEL_OK")
</pallas_src>

<mosaic_0001>
module attributes {stable_mosaic.version = 11 : i64} {
  func.func @_ff_fused_kernel(%arg0: i32, %arg1: memref<16x32xf32, #tpu.memory_space<vmem>>, %arg2: memref<32x128xf32, #tpu.memory_space<vmem>>, %arg3: memref<1x128xf32, #tpu.memory_space<vmem>>, %arg4: memref<128x32xf32, #tpu.memory_space<vmem>>, %arg5: memref<1x32xf32, #tpu.memory_space<vmem>>, %arg6: memref<16x32xf32, #tpu.memory_space<vmem>>) attributes {dimension_semantics = [#tpu.dimension_semantics<parallel>], iteration_bounds = array<i64: 1>, scalar_prefetch = 0 : i64, scratch_operands = 0 : i64, tpu.core_type = #tpu.core_type<tc>, window_params = [{transform_indices = @transform_0, window_bounds = array<i64: 16, 32>}, {pipeline_mode = #tpu.pipeline_mode<synchronous>, transform_indices = @transform_1, window_bounds = array<i64: 32, 128>}, {pipeline_mode = #tpu.pipeline_mode<synchronous>, transform_indices = @transform_2, window_bounds = array<i64: 1, 128>}, {pipeline_mode = #tpu.pipeline_mode<synchronous>, transform_indices = @transform_3, window_bounds = array<i64: 128, 32>}, {pipeline_mode = #tpu.pipeline_mode<synchronous>, transform_indices = @transform_4, window_bounds = array<i64: 1, 32>}, {transform_indices = @transform_5, window_bounds = array<i64: 16, 32>}]} {
    %c0 = arith.constant 0 : index
    %c0_0 = arith.constant 0 : index
    %0 = vector.load %arg1[%c0, %c0_0] : memref<16x32xf32, #tpu.memory_space<vmem>>, vector<16x32xf32>
    %c0_1 = arith.constant 0 : index
    %c0_2 = arith.constant 0 : index
    %1 = vector.load %arg2[%c0_1, %c0_2] : memref<32x128xf32, #tpu.memory_space<vmem>>, vector<32x128xf32>
    %cst = arith.constant dense<0.000000e+00> : vector<16x128xf32>
    %2 = tpu.matmul %0, %1, %cst {dimension_numbers = #tpu.dot_dimension_numbers<[1], [0], [0], [1], [0, 0, 1, 1], [], []>} : vector<16x32xf32>, vector<32x128xf32>, vector<16x128xf32> -> vector<16x128xf32>
    %c0_3 = arith.constant 0 : index
    %c0_4 = arith.constant 0 : index
    %3 = vector.load %arg3[%c0_3, %c0_4] : memref<1x128xf32, #tpu.memory_space<vmem>>, vector<1x128xf32>
    %4 = vector.broadcast %3 : vector<1x128xf32> to vector<16x128xf32>
    %5 = arith.addf %2, %4 : vector<16x128xf32>
    %cst_5 = arith.constant 5.000000e-01 : f32
    %6 = vector.broadcast %cst_5 : f32 to vector<16x128xf32>
    %7 = arith.mulf %6, %5 : vector<16x128xf32>
    %cst_6 = arith.constant 4.471500e-02 : f32
    %8 = vector.broadcast %cst_6 : f32 to vector<16x128xf32>
    %9 = arith.mulf %8, %5 : vector<16x128xf32>
    %10 = arith.mulf %9, %5 : vector<16x128xf32>
    %11 = arith.mulf %10, %5 : vector<16x128xf32>
    %12 = arith.addf %5, %11 : vector<16x128xf32>
    %cst_7 = arith.constant 0.797884583 : f32
    %13 = vector.broadcast %cst_7 : f32 to vector<16x128xf32>
    %14 = arith.mulf %13, %12 : vector<16x128xf32>
    %15 = math.tanh %14 : vector<16x128xf32>
    %cst_8 = arith.constant 1.000000e+00 : f32
    %16 = vector.broadcast %cst_8 : f32 to vector<16x128xf32>
    %17 = arith.addf %16, %15 : vector<16x128xf32>
    %18 = arith.mulf %7, %17 : vector<16x128xf32>
    %c0_9 = arith.constant 0 : index
    %c0_10 = arith.constant 0 : index
    %19 = vector.load %arg4[%c0_9, %c0_10] : memref<128x32xf32, #tpu.memory_space<vmem>>, vector<128x32xf32>
    %cst_11 = arith.constant dense<0.000000e+00> : vector<16x32xf32>
    %20 = tpu.matmul %18, %19, %cst_11 {dimension_numbers = #tpu.dot_dimension_numbers<[1], [0], [0], [1], [0, 0, 1, 1], [], []>} : vector<16x128xf32>, vector<128x32xf32>, vector<16x32xf32> -> vector<16x32xf32>
    %c0_12 = arith.constant 0 : index
    %c0_13 = arith.constant 0 : index
    %21 = vector.load %arg5[%c0_12, %c0_13] : memref<1x32xf32, #tpu.memory_space<vmem>>, vector<1x32xf32>
    %22 = vector.broadcast %21 : vector<1x32xf32> to vector<16x32xf32>
    %23 = arith.addf %20, %22 : vector<16x32xf32>
    %c0_14 = arith.constant 0 : index
    %c0_15 = arith.constant 0 : index
    %24 = vector.load %arg6[%c0_14, %c0_15] : memref<16x32xf32, #tpu.memory_space<vmem>>, vector<16x32xf32>
    tpu.vector_store %arg6[%c0_14, %c0_15], %23 {strides = array<i32>} : memref<16x32xf32, #tpu.memory_space<vmem>>, vector<16x32xf32>,
    return
  }
  func.func @transform_0(%arg0: i32) -> (i32, i32) {
    %c0_i32 = arith.constant 0 : i32
    %c0_i32_0 = arith.constant 0 : i32
    return %arg0, %c0_i32 : i32, i32
  }
  func.func @transform_1(%arg0: i32) -> (i32, i32) {
    %c0_i32 = arith.constant 0 : i32
    %c0_i32_0 = arith.constant 0 : i32
    %c0_i32_1 = arith.constant 0 : i32
    return %c0_i32, %c0_i32_0 : i32, i32
  }
  func.func @transform_2(%arg0: i32) -> (i32, i32) {
    %c0_i32 = arith.constant 0 : i32
    %c0_i32_0 = arith.constant 0 : i32
    %c0_i32_1 = arith.constant 0 : i32
    return %c0_i32, %c0_i32_0 : i32, i32
  }
  func.func @transform_3(%arg0: i32) -> (i32, i32) {
    %c0_i32 = arith.constant 0 : i32
    %c0_i32_0 = arith.constant 0 : i32
    %c0_i32_1 = arith.constant 0 : i32
    return %c0_i32, %c0_i32_0 : i32, i32
  }
  func.func @transform_4(%arg0: i32) -> (i32, i32) {
    %c0_i32 = arith.constant 0 : i32
    %c0_i32_0 = arith.constant 0 : i32
    %c0_i32_1 = arith.constant 0 : i32
    return %c0_i32, %c0_i32_0 : i32, i32
  }
  func.func @transform_5(%arg0: i32) -> (i32, i32) {
    %c0_i32 = arith.constant 0 : i32
    %c0_i32_0 = arith.constant 0 : i32
    return %arg0, %c0_i32 : i32, i32
  }
}

</mosaic_0001>

<bundles_post_ra>
// kernel: tpu_custom_call.1
= control target key start
LH: loop header
LB: loop body
LE: loop exit
PB: predicated region body
PF: predicated region fallthrough
CT: control target
= control target key end

     0   :  { %vm34_vm0 = vcmask 261120   ;;  %s465_s0 = inlined_call_operand.vmem [shape: f32[16,32], index: 0, kind: input, shape index: {}]   ;;  %s466_s1 = inlined_call_operand.vmem [shape: f32[32,128], index: 1, kind: input, shape index: {}]   ;;  %s467_s2 = inlined_call_operand.vmem [shape: f32[1,128], index: 2, kind: input, shape index: {}]   ;;  %s468_s3 = inlined_call_operand.vmem [shape: f32[128,32], index: 3, kind: input, shape index: {}]   ;;  %s469_s4 = inlined_call_operand.vmem [shape: f32[1,32], index: 4, kind: input, shape index: {}]   ;;  %s470_s5 = inlined_call_operand.hbm [shape: f32[16,32], index: 5, kind: output, shape index: {}]  }
   0x1   :  { %v26_v0 = vld [vmem:[%s466_s1 + $0x18] sm:$0xff]  ;;  %v25_v1 = vld [vmem:[%s466_s1 + $0x10] sm:$0xff]  ;;  %v21_v2 = vld [vmem:[%s465_s0] sm:$0xff] }
   0x2   :  { %278 = vmatprep.subr.mxu0 %v26_v0  ;;  %v24_v3 = vld [vmem:[%s466_s1 + $0x8] sm:$0xff]  ;;  %286 = vmatprep.mubr.msk.f32.mxu0 %vm34_vm0, %v21_v2 }
   0x3   :  { %279 = vmatpush3.msra.mxu0 %v26_v0 }
   0x4   :  { %10 = vsyncpa [#allocation3], 0  ;;  %280 = vmatprep.subr.mxu0 %v25_v1  ;;  %v23_v4 = vld [vmem:[%s466_s1] sm:$0xff]  ;;  %v22_v5 = vld [vmem:[%s465_s0 + $0x8] sm:$0xff]  ;;  %s353_s10 = smov [#allocation2]  }
   0x5   :  { %281 = vmatpush3.msra.mxu0 %v25_v1  ;;  %v149_v6 = vld [vmem:[%s468_s3 + $0x78] sm:$0xff]  ;;  %v148_v7 = vld [vmem:[%s468_s3 + $0x70] sm:$0xff]  ;;  %v147_v8 = vld [vmem:[%s468_s3 + $0x68] sm:$0xff]  ;;  %s239_s11 = sshll.u32 %s353_s10, 4  ;;  %s240_s11 = int_to_ptr.vmem [resolvable:$true] %s239_s11 }
   0x6   :  { %282 = vmatprep.subr.mxu0 %v24_v3  ;;  %289 = vmatprep.subr.mxu1 %v149_v6  ;;  %v146_v9 = vld [vmem:[%s468_s3 + $0x60] sm:$0xff]  ;;  %v145_v10 = vld [vmem:[%s468_s3 + $0x58] sm:$0xff]  ;;  %v144_v11 = vld [vmem:[%s468_s3 + $0x50] sm:$0xff]  ;;  %s331_s12 = scalar_lea.vmem %s240_s11, 256  ;;  %p336_p1 = scmp.lt.s32.totalorder %s240_s11, %s240_s11 }
   0x7   :  { %283 = vmatpush3.msra.mxu0 %v24_v3  ;;  %290 = vmatpush3.msra.mxu1 %v149_v6  ;;  %v143_v12 = vld [vmem:[%s468_s3 + $0x48] sm:$0xff]  ;;  %v142_v13 = vld [vmem:[%s468_s3 + $0x40] sm:$0xff]  ;;  %v141_v14 = vld [vmem:[%s468_s3 + $0x38] sm:$0xff]  ;;  %p332_p0 = scmp.ne.s32.totalorder %s240_s11, %s331_s12  ;;  %p337_p2 = scmp.lt.s32.totalorder %s331_s12, %s331_s12 }
   0x8   :  { %284 = vmatprep.subr.mxu0 %v23_v4  ;;  %291 = vmatprep.subr.mxu1 %v148_v7  ;;  %v140_v15 = vld [vmem:[%s468_s3 + $0x30] sm:$0xff]  ;;  %v139_v16 = vld [vmem:[%s468_s3 + $0x28] sm:$0xff]  ;;  %v138_v17 = vld [vmem:[%s468_s3 + $0x20] sm:$0xff] }
   0x9   :  { %285 = vmatpush3.msra.mxu0 %v23_v4  ;;  %292 = vmatpush3.msra.mxu1 %v148_v7  ;;  %v137_v18 = vld [vmem:[%s468_s3 + $0x18] sm:$0xff]  ;;  %v136_v19 = vld [vmem:[%s468_s3 + $0x10] sm:$0xff]  ;;  %v135_v20 = vld [vmem:[%s468_s3 + $0x8] sm:$0xff]  ;;  %p338_p3 = por %p337_p2, %p336_p1 }
   0xa   :  { %287 = vmatmul.mubr.msk.f32.vlgmr.msra.gmra.mxu0 %vm34_vm0, %v22_v5  ;;  %293 = vmatprep.subr.mxu1 %v147_v8  ;;  %v134_v21 = vld [vmem:[%s468_s3] sm:$0xff] }
   0xb   :  { %294 = vmatpush3.msra.mxu1 %v147_v8  ;;  %v250_v22 = vld [vmem:[%s467_s2] ss:$0 sm:$0xff]  ;;  %p339_p4 = pnand %p338_p3, %p332_p0 }
   0xc   :  { %295 = vmatprep.subr.mxu1 %v146_v9  ;;  %v253_v45 = vld [vmem:[%s469_s4] ss:$0 sm:$0xff] }
   0xd   :  { %296 = vmatpush3.msra.mxu1 %v146_v9 }
   0xe   :  { %297 = vmatprep.subr.mxu1 %v145_v10 }
   0xf   :  { %298 = vmatpush3.msra.mxu1 %v145_v10 }
  0x10   :  { %299 = vmatprep.subr.mxu1 %v144_v11 }
  0x11   :  { %300 = vmatpush3.msra.mxu1 %v144_v11 }
  0x12   :  { %301 = vmatprep.subr.mxu1 %v143_v12 }
  0x13   :  { %302 = vmatpush3.msra.mxu1 %v143_v12 }
  0x14   :  { %303 = vmatprep.subr.mxu1 %v142_v13 }
  0x15   :  { %304 = vmatpush3.msra.mxu1 %v142_v13 }
  0x16   :  { %305 = vmatprep.subr.mxu1 %v141_v14 }
  0x17   :  { %306 = vmatpush3.msra.mxu1 %v141_v14 }
  0x18   :  { %307 = vmatprep.subr.mxu1 %v140_v15 }
  0x19   :  { %308 = vmatpush3.msra.mxu1 %v140_v15 }
  0x1a   :  { %309 = vmatprep.subr.mxu1 %v139_v16 }
  0x1b   :  { %310 = vmatpush3.msra.mxu1 %v139_v16 }
  0x1c   :  { %311 = vmatprep.subr.mxu1 %v138_v17 }
  0x1d   :  { %312 = vmatpush3.msra.mxu1 %v138_v17 }
  0x1e   :  { %313 = vmatprep.subr.mxu1 %v137_v18 }
  0x1f   :  { %314 = vmatpush3.msra.mxu1 %v137_v18 }
  0x20   :  { %315 = vmatprep.subr.mxu1 %v136_v19 }
  0x21   :  { %316 = vmatpush3.msra.mxu1 %v136_v19 }
  0x22   :  { %317 = vmatprep.subr.mxu1 %v135_v20 }
  0x23   :  { %318 = vmatpush3.msra.mxu1 %v135_v20 }
  0x24   :  { %319 = vmatprep.subr.mxu1 %v134_v21 }
  0x25   :  { %320 = vmatpush3.msra.mxu1 %v134_v21 }
  0xca   :  { %v288_v23 = vpop.f32.mrf.mxu0 }
  0xcb   :  { %v113_v24 = vadd.f32 %v288_v23, %v250_v22 }
  0xcc   :  { %v107_v25 = vpop.f32.mrf.mxu0 }
  0xcd   :  { %v119_v26 = vmul.f32 0.044715, %v113_v24  ;;  %v108_v27 = vadd.f32 %v250_v22, %v107_v25  ;;  %v117_v42 = vmul.f32 0.5, %v113_v24 }
  0xcf   :  { %v121_v28 = vmul.f32 %v119_v26, %v113_v24  ;;  %v118_v29 = vmul.f32 0.044715, %v108_v27  ;;  %v116_v40 = vmul.f32 0.5, %v108_v27 }
  0xd1   :  { %v120_v30 = vmul.f32 %v118_v29, %v108_v27  ;;  %v123_v31 = vmul.f32 %v121_v28, %v113_v24 }
  0xd3   :  { %v122_v32 = vmul.f32 %v120_v30, %v108_v27  ;;  %v125_v33 = vadd.f32 %v123_v31, %v113_v24 }
  0xd5   :  { %v124_v34 = vadd.f32 %v122_v32, %v108_v27  ;;  %v127_v35 = vmul.f32 0.7978846, %v125_v33 }
  0xd7   :  { %v126_v36 = vmul.f32 0.7978846, %v124_v34  ;;  %327 = vtanh.f32 %v127_v35 }
  0xd9   :  { %329 = vtanh.f32 %v126_v36 }
  0xe4   :  { %v328_v37 = vpop.eup %327 }
  0xe5   :  { %v131_v39 = vadd.f32 1.0, %v328_v37 }
  0xe6   :  { %v330_v38 = vpop.eup %329 }
  0xe7   :  { %v130_v41 = vadd.f32 1.0, %v330_v38  ;;  %v133_v44 = vmul.f32 %v131_v39, %v117_v42 }
  0xe9   :  { %v132_v43 = vmul.f32 %v130_v41, %v116_v40 }
  0xeb   :  { %321 = vmatprep.mubr.f32.mxu1 %v132_v43 }
  0xec   :  { %322 = vmatmul.mubr.f32.vlgmr.msra.gmra.mxu1 %v133_v44 }
 0x1ac   :  { %v323_v46 = vpop.f32.mrf.mxu1 }
 0x1ad   :  { %v229_v47 = vadd.f32 %v323_v46, %v253_v45 }
 0x1ae   :  { %v223_v48 = vpop.f32.mrf.mxu1 }
 0x1af   :  { %233 = vst.msk [vmem:[#allocation2 + $0x8] sm:$0xff] %vm34_vm0, %v229_v47  ;;  %v224_v49 = vadd.f32 %v253_v45, %v223_v48 }
 0x1b1   :  { %232 = vst.msk [vmem:[#allocation2] sm:$0xff] %vm34_vm0, %v224_v49 }
 0x1b2   :  { %342 = shalt.err (!%p339_p4)
}
 0x1b3   :  { %s354_s13 = smov 128   ;;  %s355_s4 = smov 8  }
 0x1b4   :  { %245 = dma.vmem_to_hbm [thread:$0]  %s240_s11, 256, %s470_s5, [#allocation3], %s354_s13, %s354_s13, %s355_s4  }
 0x1b5   :  { %351 = dma.done.wait [#allocation3], 256  }
 0x1b6   :  { %352 = vsyncadd [#allocation3], 4294967040 }
 0x1b7   :  { %249 = vsyncpa [#allocation3], 1 }

</bundles_post_ra>
